<compile_context>
chip_gen: v6e
topology: v6e:2x2x1
jax: 0.10.0
libtpu: 0.0.40
codegen_flags: <defaults>
</compile_context>

<pallas_src>
import functools
import math

import jax
import jax.numpy as jnp
from jax import lax
from jax.experimental import pallas as pl
from jax.experimental.pallas import tpu as pltpu

LANE = 128  # TPU lane width


def _round_up(x, m):
    return ((x + m - 1) // m) * m


def _pick_tile(n_pad, target):
    for t in (target, target // 2, 128):
        if t <= n_pad and n_pad % t == 0:
            return t
    return n_pad


# ----------------------------------------------------------------------------
# Kernels
# ----------------------------------------------------------------------------
def _xw_kernel(x_ref, nsrc_ref, w_ref, xw_ref):
    """XW = (X * norm_src) @ W  for one row tile (computed once per layer)."""
    x = x_ref[...] * nsrc_ref[...]                               # (tm, Fin_p)
    xw_ref[...] = jnp.dot(x, w_ref[...], preferred_element_type=jnp.float32)


def _agg_kernel(a_ref, xw_ref, ndst_ref, b_ref, o_ref, acc_ref, *, apply_relu):
    """Tiled dst-normalized aggregation: acc += A_tile @ XW_tile, finalize at last k."""
    k = pl.program_id(1)

    @pl.when(k == 0)
    def _():
        acc_ref[...] = jnp.zeros_like(acc_ref)

    # A is stored/streamed as bf16 (0/1 exact); widen per tile for the f32 MXU pass.
    a = a_ref[...].astype(jnp.float32)                           # (tm, tk)
    acc_ref[...] += jnp.dot(a, xw_ref[...], preferred_element_type=jnp.float32)

    @pl.when(k == pl.num_programs(1) - 1)
    def _():
        h = acc_ref[...] * ndst_ref[...] + b_ref[...]            # (tm, Hid_p)
        if apply_relu:
            h = jnp.maximum(h, 0.0)
        o_ref[...] = h.astype(o_ref.dtype)


def _agg_head_kernel(a_ref, xw_ref, ndst_ref, b_ref, wm_ref, bm_ref, o_ref, acc_ref):
    """Last GraphConv (no activation) fused with the nn.Linear head."""
    k = pl.program_id(1)

    @pl.when(k == 0)
    def _():
        acc_ref[...] = jnp.zeros_like(acc_ref)

    a = a_ref[...].astype(jnp.float32)
    acc_ref[...] += jnp.dot(a, xw_ref[...], preferred_element_type=jnp.float32)

    @pl.when(k == pl.num_programs(1) - 1)
    def _():
        h = acc_ref[...] * ndst_ref[...] + b_ref[...]            # last GraphConv
        y = jnp.dot(h, wm_ref[...], preferred_element_type=jnp.float32) + bm_ref[...]
        o_ref[...] = y.astype(o_ref.dtype)


# ----------------------------------------------------------------------------
# pallas_call wrappers
# ----------------------------------------------------------------------------
def _xw(x, nsrc, w, *, tm):
    n_pad, fin_p = x.shape
    hid_p = w.shape[1]
    return pl.pallas_call(
        _xw_kernel,
        out_shape=jax.ShapeDtypeStruct((n_pad, hid_p), jnp.float32),
        grid_spec=pltpu.PrefetchScalarGridSpec(
            num_scalar_prefetch=0,
            grid=(n_pad // tm,),
            in_specs=[
                pl.BlockSpec((tm, fin_p), lambda i: (i, 0)),
                pl.BlockSpec((tm, 1), lambda i: (i, 0)),
                pl.BlockSpec((fin_p, hid_p), lambda i: (0, 0)),
            ],
            out_specs=pl.BlockSpec((tm, hid_p), lambda i: (i, 0)),
        ),
        compiler_params=pltpu.CompilerParams(dimension_semantics=("parallel",)),
    )(x, nsrc, w)


def _aggregate(adj_bf16, xw, ndst, b, *, tm, tk, apply_relu):
    n_pad = adj_bf16.shape[0]
    hid_p = xw.shape[1]
    return pl.pallas_call(
        functools.partial(_agg_kernel, apply_relu=apply_relu),
        out_shape=jax.ShapeDtypeStruct((n_pad, hid_p), jnp.float32),
        grid_spec=pltpu.PrefetchScalarGridSpec(
            num_scalar_prefetch=0,
            grid=(n_pad // tm, n_pad // tk),
            in_specs=[
                pl.BlockSpec((tm, tk), lambda i, k: (i, k)),        # A tile (bf16)
                pl.BlockSpec((tk, hid_p), lambda i, k: (k, 0)),     # XW tile
                pl.BlockSpec((tm, 1), lambda i, k: (i, 0)),         # norm_dst rows
                pl.BlockSpec((1, hid_p), lambda i, k: (0, 0)),      # bias (resident)
            ],
            out_specs=pl.BlockSpec((tm, hid_p), lambda i, k: (i, 0)),
            scratch_shapes=[pltpu.VMEM((tm, hid_p), jnp.float32)],
        ),
        compiler_params=pltpu.CompilerParams(
            dimension_semantics=("parallel", "arbitrary"),
        ),
    )(adj_bf16, xw, ndst, b)


def _aggregate_head(adj_bf16, xw, ndst, b, w_mlp, b_mlp, *, tm, tk):
    n_pad = adj_bf16.shape[0]
    hid_p = xw.shape[1]
    out_p = w_mlp.shape[1]
    return pl.pallas_call(
        _agg_head_kernel,
        out_shape=jax.ShapeDtypeStruct((n_pad, out_p), jnp.float32),
        grid_spec=pltpu.PrefetchScalarGridSpec(
            num_scalar_prefetch=0,
            grid=(n_pad // tm, n_pad // tk),
            in_specs=[
                pl.BlockSpec((tm, tk), lambda i, k: (i, k)),        # A tile (bf16)
                pl.BlockSpec((tk, hid_p), lambda i, k: (k, 0)),     # XW tile
                pl.BlockSpec((tm, 1), lambda i, k: (i, 0)),         # norm_dst rows
                pl.BlockSpec((1, hid_p), lambda i, k: (0, 0)),      # GraphConv bias
                pl.BlockSpec((hid_p, out_p), lambda i, k: (0, 0)),  # head weight
                pl.BlockSpec((1, out_p), lambda i, k: (0, 0)),      # head bias
            ],
            out_specs=pl.BlockSpec((tm, out_p), lambda i, k: (i, 0)),
            scratch_shapes=[pltpu.VMEM((tm, hid_p), jnp.float32)],
        ),
        compiler_params=pltpu.CompilerParams(
            dimension_semantics=("parallel", "arbitrary"),
        ),
    )(adj_bf16, xw, ndst, b, w_mlp, b_mlp)


# ----------------------------------------------------------------------------
# Model wrapper
# ----------------------------------------------------------------------------
class GCNPallas:
    """JAX/Pallas port of the PyTorch GCN module (forward pass, eval mode)."""

    def __init__(self, in_size, hid_size, out_size, num_layers=2, key=None):
        assert num_layers >= 2, "Number of layers should be at least 2."
        if key is None:
            key = jax.random.PRNGKey(0)
        self.in_size, self.hid_size, self.out_size = in_size, hid_size, out_size
        self.num_layers = num_layers
        self._fin_p = _round_up(in_size, LANE)
        self._hid_p = _round_up(hid_size, LANE)
        self._out_p = _round_up(out_size, LANE)

        def glorot(k, fi, fo):
            limit = math.sqrt(6.0 / (fi + fo))
            return jax.random.uniform(k, (fi, fo), jnp.float32, -limit, limit)

        keys = jax.random.split(key, num_layers + 1)
        dims = [in_size] + [hid_size] * num_layers
        dims_p = [self._fin_p] + [self._hid_p] * num_layers

        self.conv_w, self.conv_b = [], []
        for i in range(num_layers):
            w = glorot(keys[i], dims[i], dims[i + 1])
            w_p = jnp.zeros((dims_p[i], dims_p[i + 1]), jnp.float32)
            w_p = w_p.at[: dims[i], : dims[i + 1]].set(w)
            self.conv_w.append(w_p)
            self.conv_b.append(jnp.zeros((1, dims_p[i + 1]), jnp.float32))

        wm = glorot(keys[-1], hid_size, out_size)
        self.w_mlp = (
            jnp.zeros((self._hid_p, self._out_p), jnp.float32)
            .at[:hid_size, :out_size]
            .set(wm)
        )
        self.b_mlp = jnp.zeros((1, self._out_p), jnp.float32)

    def __call__(self, adj, features):
        n = features.shape[0]
        n_pad = _round_up(max(n, 1), LANE)
        tm = _pick_tile(n_pad, 256)
        tk = _pick_tile(n_pad, 512)

        adj = adj.astype(jnp.float32)
        # DGL GraphConv norm='both': degrees from the FULL adjacency, clamped >= 1.
        out_deg = jnp.sum(adj, axis=0)                        # (N,) out-degree of src
        in_deg = jnp.sum(adj, axis=1)                         # (N,) in-degree of dst
        nsrc = lax.rsqrt(jnp.maximum(out_deg, 1.0))[:, None]  # (N, 1)
        ndst = lax.rsqrt(jnp.maximum(in_deg, 1.0))[:, None]   # (N, 1)
        nsrc = jnp.pad(nsrc, ((0, n_pad - n), (0, 0)), constant_values=1.0)
        ndst = jnp.pad(ndst, ((0, n_pad - n), (0, 0)), constant_values=1.0)

        # Stream the adjacency in bf16 (0/1 values are exact); padded rows/cols are 0
        # so padded nodes never contribute to real nodes.
        adj_p = jnp.pad(adj, ((0, n_pad - n), (0, n_pad - n))).astype(jnp.bfloat16)

        h = jnp.pad(
            features.astype(jnp.float32),
            ((0, n_pad - n), (0, self._fin_p - features.shape[1])),
        )

        for i in range(self.num_layers - 1):
            xw = _xw(h, nsrc, self.conv_w[i], tm=tm)
            h = _aggregate(adj_p, xw, ndst, self.conv_b[i], tm=tm, tk=tk, apply_relu=True)
            # TODO(synk): nn.Dropout(0.5) is identity in eval mode; omitted here.

        # Last GraphConv (no activation) fused with the nn.Linear head.
        xw = _xw(h, nsrc, self.conv_w[-1], tm=tm)
        out = _aggregate_head(
            adj_p, xw, ndst, self.conv_b[-1], self.w_mlp, self.b_mlp, tm=tm, tk=tk
        )
        return out[:n, : self.out_size]


def _reference_forward(model, adj, features):
    """Pure-JAX reference (same padded params), for a numeric sanity check."""
    adj = adj.astype(jnp.float32)
    out_deg = jnp.sum(adj, axis=0)
    in_deg = jnp.sum(adj, axis=1)
    nsrc = lax.rsqrt(jnp.maximum(out_deg, 1.0))[:, None]
    ndst = lax.rsqrt(jnp.maximum(in_deg, 1.0))[:, None]
    h = jnp.pad(features.astype(jnp.float32),
                ((0, 0), (0, model._fin_p - features.shape[1])))
    for i in range(model.num_layers):
        h = (adj @ ((h * nsrc) @ model.conv_w[i])) * ndst + model.conv_b[i]
        if i < model.num_layers - 1:
            h = jnp.maximum(h, 0.0)
    return (h @ model.w_mlp + model.b_mlp)[:, : model.out_size]


# ----------------------------------------------------------------------------
# Demo
# ----------------------------------------------------------------------------
if __name__ == "__main__":
    key = jax.random.PRNGKey(0)
    k_feat, k_model = jax.random.split(key)

    N = 16
    IN_SIZE = 8
    HID_SIZE = 32
    OUT_SIZE = 4

    # Deterministic small graph: undirected ring + self loops (dense adjacency).
    adj = jnp.zeros((N, N), jnp.float32)
    idx = jnp.arange(N)
    adj = adj.at[idx, idx].set(1.0)
    adj = adj.at[idx, (idx + 1) % N].set(1.0)
    adj = adj.at[(idx + 1) % N, idx].set(1.0)

    features = jax.random.normal(k_feat, (N, IN_SIZE), jnp.float32)

    model = GCNPallas(IN_SIZE, HID_SIZE, OUT_SIZE, num_layers=2, key=k_model)
    out = jax.block_until_ready(model(adj, features))

    assert out.shape == (N, OUT_SIZE), out.shape
    assert out.dtype == jnp.float32

    ref = jax.block_until_ready(_reference_forward(model, adj, features))
    max_err = float(jnp.max(jnp.abs(out - ref)))
    assert max_err < 1e-2, f"max abs err {max_err}"

    print("KERNEL_OK")
</pallas_src>

<mosaic_0001>
module attributes {stable_mosaic.version = 11 : i64} {
  func.func @_xw_kernel(%arg0: i32, %arg1: memref<128x128xf32, #tpu.memory_space<vmem>>, %arg2: memref<128x1xf32, #tpu.memory_space<vmem>>, %arg3: memref<128x128xf32, #tpu.memory_space<vmem>>, %arg4: memref<128x128xf32, #tpu.memory_space<vmem>>) attributes {dimension_semantics = [#tpu.dimension_semantics<parallel>], iteration_bounds = array<i64: 1>, scalar_prefetch = 0 : i64, scratch_operands = 0 : i64, tpu.core_type = #tpu.core_type<tc>, window_params = [{transform_indices = @transform_0, window_bounds = array<i64: 128, 128>}, {transform_indices = @transform_1, window_bounds = array<i64: 128, 1>}, {pipeline_mode = #tpu.pipeline_mode<synchronous>, transform_indices = @transform_2, window_bounds = array<i64: 128, 128>}, {transform_indices = @transform_3, window_bounds = array<i64: 128, 128>}]} {
    %c0 = arith.constant 0 : index
    %c0_0 = arith.constant 0 : index
    %0 = vector.load %arg1[%c0, %c0_0] : memref<128x128xf32, #tpu.memory_space<vmem>>, vector<128x128xf32>
    %c0_1 = arith.constant 0 : index
    %c0_2 = arith.constant 0 : index
    %1 = vector.load %arg2[%c0_1, %c0_2] : memref<128x1xf32, #tpu.memory_space<vmem>>, vector<128x1xf32>
    %2 = vector.broadcast %1 : vector<128x1xf32> to vector<128x128xf32>
    %3 = arith.mulf %0, %2 : vector<128x128xf32>
    %c0_3 = arith.constant 0 : index
    %c0_4 = arith.constant 0 : index
    %4 = vector.load %arg3[%c0_3, %c0_4] : memref<128x128xf32, #tpu.memory_space<vmem>>, vector<128x128xf32>
    %cst = arith.constant dense<0.000000e+00> : vector<128x128xf32>
    %5 = tpu.matmul %3, %4, %cst {dimension_numbers = #tpu.dot_dimension_numbers<[1], [0], [0], [1], [0, 0, 1, 1], [], []>} : vector<128x128xf32>, vector<128x128xf32>, vector<128x128xf32> -> vector<128x128xf32>
    %c0_5 = arith.constant 0 : index
    %c0_6 = arith.constant 0 : index
    %6 = vector.load %arg4[%c0_5, %c0_6] : memref<128x128xf32, #tpu.memory_space<vmem>>, vector<128x128xf32>
    tpu.vector_store %arg4[%c0_5, %c0_6], %5 {strides = array<i32>} : memref<128x128xf32, #tpu.memory_space<vmem>>, vector<128x128xf32>,
    return
  }
  func.func @transform_0(%arg0: i32) -> (i32, i32) {
    %c0_i32 = arith.constant 0 : i32
    %c0_i32_0 = arith.constant 0 : i32
    return %arg0, %c0_i32 : i32, i32
  }
  func.func @transform_1(%arg0: i32) -> (i32, i32) {
    %c0_i32 = arith.constant 0 : i32
    %c0_i32_0 = arith.constant 0 : i32
    return %arg0, %c0_i32 : i32, i32
  }
  func.func @transform_2(%arg0: i32) -> (i32, i32) {
    %c0_i32 = arith.constant 0 : i32
    %c0_i32_0 = arith.constant 0 : i32
    %c0_i32_1 = arith.constant 0 : i32
    return %c0_i32, %c0_i32_0 : i32, i32
  }
  func.func @transform_3(%arg0: i32) -> (i32, i32) {
    %c0_i32 = arith.constant 0 : i32
    %c0_i32_0 = arith.constant 0 : i32
    return %arg0, %c0_i32 : i32, i32
  }
}

</mosaic_0001>

<bundles_post_ra>
// kernel: tpu_custom_call.1
= control target key start
LH: loop header
LB: loop body
LE: loop exit
PB: predicated region body
PF: predicated region fallthrough
CT: control target
= control target key end

     0   :  { %8 = vsyncpa [#allocation3], 0  ;;  %s655_s0 = inlined_call_operand.vmem [shape: f32[128,128], index: 0, kind: input, shape index: {}]   ;;  %s656_s1 = inlined_call_operand.vmem [shape: f32[128,1], index: 1, kind: input, shape index: {}]   ;;  %s657_s2 = inlined_call_operand.hbm [shape: f32[128,128], index: 2, kind: input, shape index: {}]   ;;  %s658_s3 = inlined_call_operand.hbm [shape: f32[128,128], index: 3, kind: output, shape index: {}]  }
   0x1   :  { %9 = vsyncpa [#allocation4], 0  ;;  %s522_s12 = smov [#allocation2]  }
   0x2   :  { %s19_s13 = sshll.u32 %s522_s12, 4  ;;  %s20_s13 = int_to_ptr.vmem [resolvable:$true] %s19_s13 }
   0x3   :  { %s486_s14 = scalar_lea.vmem %s20_s13, 2048  ;;  %p491_p1 = scmp.lt.s32.totalorder %s20_s13, %s20_s13 }
   0x4   :  { %p487_p0 = scmp.ne.s32.totalorder %s20_s13, %s486_s14  ;;  %p492_p2 = scmp.lt.s32.totalorder %s486_s14, %s486_s14 }
   0x6   :  { %p493_p3 = por %p492_p2, %p491_p1 }
   0x8   :  { %p494_p4 = pnand %p493_p3, %p487_p0 }
   0xa   :  { %497 = shalt.err (!%p494_p4)
}
   0xb   :  { %s523_s15 = smov 128   ;;  %s524_s16 = smov 8  }
   0xc   :  { %25 = dma.hbm_to_vmem [thread:$0]  %s657_s2, 2048, %s20_s13, [#allocation3], %s523_s15, %s523_s15, %s524_s16  }
   0xd   :  { %518 = dma.done.wait [#allocation3], 2048  }
   0xe   :  { %519 = vsyncadd [#allocation3], 4294965248  ;;  %v525_v0 = vmov 0   ;;  %v46_v1 = vld [vmem:[%s656_s1 + $0x8] sm:$0xff]  ;;  %v45_v2 = vld [vmem:[%s656_s1] sm:$0xff] }
   0xf   :  { %477 = vset.pattern.permute.xlu1 %v525_v0  ;;  %476 = vset.pattern.permute.xlu0 %v525_v0  ;;  %v54_v3 = vld [vmem:[%s656_s1 + $0x48] sm:$0xff]  ;;  %v53_v4 = vld [vmem:[%s656_s1 + $0x40] sm:$0xff]  ;;  %v172_v5 = vld [vmem:[#allocation2 + $0x78] sm:$0xff] }
  0x10   :  { %68 = vperm.xlu1 %477, %v46_v1   ;;  %63 = vperm.xlu0 %476, %v45_v2   ;;  %v171_v6 = vld [vmem:[#allocation2 + $0x70] sm:$0xff]  ;;  %v170_v9 = vld [vmem:[#allocation2 + $0x68] sm:$0xff]  ;;  %v56_v10 = vld [vmem:[%s656_s1 + $0x58] sm:$0xff] }
  0x11   :  { %v55_v7 = vld [vmem:[%s656_s1 + $0x50] sm:$0xff]  ;;  %383 = vmatprep.subr.mxu0 %v172_v5  ;;  %439 = vmatprep.subr.mxu1 %v172_v5  ;;  %v48_v11 = vld [vmem:[%s656_s1 + $0x18] sm:$0xff]  ;;  %v169_v12 = vld [vmem:[#allocation2 + $0x60] sm:$0xff] }
  0x12   :  { %v47_v8 = vld [vmem:[%s656_s1 + $0x10] sm:$0xff]  ;;  %384 = vmatpush3.msra.mxu0 %v172_v5  ;;  %455 = vmatpush3.msra.mxu1 %v172_v5  ;;  %v168_v13 = vld [vmem:[#allocation2 + $0x58] sm:$0xff]  ;;  %v57_v14 = vld [vmem:[%s656_s1 + $0x60] sm:$0xff] }
  0x13   :  { %385 = vmatprep.subr.mxu0 %v171_v6  ;;  %440 = vmatprep.subr.mxu1 %v171_v6  ;;  %v49_v15 = vld [vmem:[%s656_s1 + $0x20] sm:$0xff]  ;;  %v167_v16 = vld [vmem:[#allocation2 + $0x50] sm:$0xff]  ;;  %v58_v17 = vld [vmem:[%s656_s1 + $0x68] sm:$0xff] }
  0x14   :  { %108 = vperm.xlu1 %477, %v54_v3   ;;  %103 = vperm.xlu0 %476, %v53_v4   ;;  %v50_v18 = vld [vmem:[%s656_s1 + $0x28] sm:$0xff]  ;;  %v165_v20 = vld [vmem:[#allocation2 + $0x40] sm:$0xff]  ;;  %v59_v21 = vld [vmem:[%s656_s1 + $0x70] sm:$0xff] }
  0x15   :  { %386 = vmatpush3.msra.mxu0 %v171_v6  ;;  %456 = vmatpush3.msra.mxu1 %v171_v6  ;;  %v166_v19 = vld [vmem:[#allocation2 + $0x48] sm:$0xff]  ;;  %v51_v22 = vld [vmem:[%s656_s1 + $0x30] sm:$0xff]  ;;  %v164_v23 = vld [vmem:[#allocation2 + $0x38] sm:$0xff] }
  0x16   :  { %387 = vmatprep.subr.mxu0 %v170_v9  ;;  %441 = vmatprep.subr.mxu1 %v170_v9  ;;  %v60_v24 = vld [vmem:[%s656_s1 + $0x78] sm:$0xff]  ;;  %v163_v26 = vld [vmem:[#allocation2 + $0x30] sm:$0xff]  ;;  %v162_v27 = vld [vmem:[#allocation2 + $0x28] sm:$0xff] }
  0x17   :  { %388 = vmatpush3.msra.mxu0 %v170_v9  ;;  %457 = vmatpush3.msra.mxu1 %v170_v9  ;;  %v52_v25 = vld [vmem:[%s656_s1 + $0x38] sm:$0xff]  ;;  %v161_v28 = vld [vmem:[#allocation2 + $0x20] sm:$0xff]  ;;  %v159_v30 = vld [vmem:[#allocation2 + $0x10] sm:$0xff] }
  0x18   :  { %113 = vperm.xlu1 %477, %v55_v7   ;;  %73 = vperm.xlu0 %476, %v47_v8   ;;  %v160_v29 = vld [vmem:[#allocation2 + $0x18] sm:$0xff]  ;;  %v158_v31 = vld [vmem:[#allocation2 + $0x8] sm:$0xff]  ;;  %v157_v32 = vld [vmem:[#allocation2] sm:$0xff] }
  0x19   :  { %389 = vmatprep.subr.mxu0 %v169_v12  ;;  %442 = vmatprep.subr.mxu1 %v169_v12  ;;  %v30_v33 = vld [vmem:[%s655_s0 + $0x8] sm:$0xff]  ;;  %v29_v34 = vld [vmem:[%s655_s0] sm:$0xff]  ;;  %v39_v45 = vld [vmem:[%s655_s0 + $0x50] sm:$0xff] }
  0x1a   :  { %390 = vmatpush3.msra.mxu0 %v169_v12  ;;  %458 = vmatpush3.msra.mxu1 %v169_v12  ;;  %v38_v39 = vld [vmem:[%s655_s0 + $0x48] sm:$0xff]  ;;  %v37_v40 = vld [vmem:[%s655_s0 + $0x40] sm:$0xff]  ;;  %v31_v46 = vld [vmem:[%s655_s0 + $0x10] sm:$0xff] }
  0x1b   :  { %391 = vmatprep.subr.mxu0 %v168_v13  ;;  %443 = vmatprep.subr.mxu1 %v168_v13  ;;  %v40_v51 = vld [vmem:[%s655_s0 + $0x58] sm:$0xff]  ;;  %v41_v57 = vld [vmem:[%s655_s0 + $0x60] sm:$0xff]  ;;  %v42_v63 = vld [vmem:[%s655_s0 + $0x68] sm:$0xff] }
  0x1c   :  { %118 = vperm.xlu1 %477, %v56_v10   ;;  %78 = vperm.xlu0 %476, %v48_v11   ;;  %v32_v52 = vld [vmem:[%s655_s0 + $0x18] sm:$0xff]  ;;  %v33_v58 = vld [vmem:[%s655_s0 + $0x20] sm:$0xff]  ;;  %v34_v0 = vld [vmem:[%s655_s0 + $0x28] sm:$0xff] }
  0x1d   :  { %392 = vmatpush3.msra.mxu0 %v168_v13  ;;  %459 = vmatpush3.msra.mxu1 %v168_v13  ;;  %v43_v5 = vld [vmem:[%s655_s0 + $0x70] sm:$0xff]  ;;  %v44_v11 = vld [vmem:[%s655_s0 + $0x78] sm:$0xff] }
  0x1e   :  { %393 = vmatprep.subr.mxu0 %v167_v16  ;;  %444 = vmatprep.subr.mxu1 %v167_v16  ;;  %v35_v6 = vld [vmem:[%s655_s0 + $0x30] sm:$0xff]  ;;  %v36_v12 = vld [vmem:[%s655_s0 + $0x38] sm:$0xff]  ;;  %s526_s0 = smov [#allocation5]  }
  0x1f   :  { %394 = vmatpush3.msra.mxu0 %v167_v16  ;;  %460 = vmatpush3.msra.mxu1 %v167_v16  ;;  %s339_s28 = sshll.u32 %s526_s0, 4  ;;  %s340_s28 = int_to_ptr.vmem [resolvable:$true] %s339_s28 }
  0x20   :  { %123 = vperm.xlu1 %477, %v57_v14   ;;  %83 = vperm.xlu0 %476, %v49_v15   ;;  %s498_s29 = scalar_lea.vmem %s340_s28, 2048  ;;  %p503_p6 = scmp.lt.s32.totalorder %s340_s28, %s340_s28 }
  0x21   :  { %395 = vmatprep.subr.mxu0 %v166_v19  ;;  %445 = vmatprep.subr.mxu1 %v166_v19  ;;  %p499_p5 = scmp.ne.s32.totalorder %s340_s28, %s498_s29  ;;  %p504_p7 = scmp.lt.s32.totalorder %s498_s29, %s498_s29 }
  0x22   :  { %396 = vmatpush3.msra.mxu0 %v166_v19  ;;  %461 = vmatpush3.msra.mxu1 %v166_v19 }
  0x23   :  { %397 = vmatprep.subr.mxu0 %v165_v20  ;;  %446 = vmatprep.subr.mxu1 %v165_v20  ;;  %p505_p8 = por %p504_p7, %p503_p6 }
  0x24   :  { %128 = vperm.xlu1 %477, %v58_v17   ;;  %88 = vperm.xlu0 %476, %v50_v18  }
  0x25   :  { %398 = vmatpush3.msra.mxu0 %v165_v20  ;;  %462 = vmatpush3.msra.mxu1 %v165_v20  ;;  %p506_p9 = pnand %p505_p8, %p499_p5 }
  0x26   :  { %399 = vmatprep.subr.mxu0 %v164_v23  ;;  %447 = vmatprep.subr.mxu1 %v164_v23 }
  0x27   :  { %400 = vmatpush3.msra.mxu0 %v164_v23  ;;  %463 = vmatpush3.msra.mxu1 %v164_v23 }
  0x28   :  { %133 = vperm.xlu1 %477, %v59_v21   ;;  %93 = vperm.xlu0 %476, %v51_v22  }
  0x29   :  { %401 = vmatprep.subr.mxu0 %v163_v26  ;;  %448 = vmatprep.subr.mxu1 %v163_v26 }
  0x2a   :  { %402 = vmatpush3.msra.mxu0 %v163_v26  ;;  %464 = vmatpush3.msra.mxu1 %v163_v26 }
  0x2b   :  { %403 = vmatprep.subr.mxu0 %v162_v27  ;;  %449 = vmatprep.subr.mxu1 %v162_v27 }
  0x2c   :  { %138 = vperm.xlu1 %477, %v60_v24   ;;  %98 = vperm.xlu0 %476, %v52_v25  }
  0x2d   :  { %404 = vmatpush3.msra.mxu0 %v162_v27  ;;  %465 = vmatpush3.msra.mxu1 %v162_v27 }
  0x2e   :  { %405 = vmatprep.subr.mxu0 %v161_v28  ;;  %450 = vmatprep.subr.mxu1 %v161_v28 }
  0x2f   :  { %406 = vmatpush3.msra.mxu0 %v161_v28  ;;  %466 = vmatpush3.msra.mxu1 %v161_v28 }
  0x30   :  { %407 = vmatprep.subr.mxu0 %v160_v29  ;;  %451 = vmatprep.subr.mxu1 %v160_v29 }
  0x31   :  { %408 = vmatpush3.msra.mxu0 %v160_v29  ;;  %467 = vmatpush3.msra.mxu1 %v160_v29 }
  0x32   :  { %409 = vmatprep.subr.mxu0 %v159_v30  ;;  %452 = vmatprep.subr.mxu1 %v159_v30 }
  0x33   :  { %410 = vmatpush3.msra.mxu0 %v159_v30  ;;  %468 = vmatpush3.msra.mxu1 %v159_v30 }
  0x34   :  { %411 = vmatprep.subr.mxu0 %v158_v31  ;;  %453 = vmatprep.subr.mxu1 %v158_v31 }
  0x35   :  { %412 = vmatpush3.msra.mxu0 %v158_v31  ;;  %469 = vmatpush3.msra.mxu1 %v158_v31 }
  0x36   :  { %413 = vmatprep.subr.mxu0 %v157_v32  ;;  %454 = vmatprep.subr.mxu1 %v157_v32 }
  0x37   :  { %414 = vmatpush3.msra.mxu0 %v157_v32  ;;  %470 = vmatpush3.msra.mxu1 %v157_v32 }
  0x8b   :  { %v69_v35 = vpop.permute.xlu1 %68  ;;  %v64_v36 = vpop.permute.xlu0 %63 }
  0x8c   :  { %v142_v37 = vmul.f32 %v69_v35, %v30_v33  ;;  %v141_v38 = vmul.f32 %v64_v36, %v29_v34 }
  0x8e   :  { %415 = vmatprep.mubr.f32.mxu0 %v141_v38 }
  0x8f   :  { %v109_v41 = vpop.permute.xlu1 %108  ;;  %v104_v42 = vpop.permute.xlu0 %103  ;;  %416 = vmatmul.mubr.f32.vlgmr.msra.gmra.mxu0 %v142_v37 }
  0x90   :  { %v150_v43 = vmul.f32 %v109_v41, %v38_v39  ;;  %v149_v44 = vmul.f32 %v104_v42, %v37_v40 }
  0x92   :  { %427 = vmatprep.mubr.f32.mxu1 %v149_v44 }
  0x93   :  { %v114_v47 = vpop.permute.xlu1 %113  ;;  %v74_v48 = vpop.permute.xlu0 %73  ;;  %428 = vmatmul.mubr.f32.vlgmr.msra.gmra.mxu1 %v150_v43 }
  0x94   :  { %v151_v49 = vmul.f32 %v114_v47, %v39_v45  ;;  %v143_v50 = vmul.f32 %v74_v48, %v31_v46 }
  0x96   :  { %418 = vmatprep.mubr.f32.mxu0 %v143_v50  ;;  %430 = vmatprep.mubr.f32.mxu1 %v151_v49 }
  0x97   :  { %v119_v53 = vpop.permute.xlu1 %118  ;;  %v79_v54 = vpop.permute.xlu0 %78 }
  0x98   :  { %v152_v55 = vmul.f32 %v119_v53, %v40_v51  ;;  %v144_v56 = vmul.f32 %v79_v54, %v32_v52 }
  0x9a   :  { %419 = vmatmul.mubr.f32.gmra.mxu0 %v144_v56  ;;  %431 = vmatmul.mubr.f32.gmra.mxu1 %v152_v55 }
  0x9b   :  { %v124_v59 = vpop.permute.xlu1 %123  ;;  %v84_v60 = vpop.permute.xlu0 %83 }
  0x9c   :  { %v153_v61 = vmul.f32 %v124_v59, %v41_v57  ;;  %v145_v62 = vmul.f32 %v84_v60, %v33_v58 }
  0x9e   :  { %421 = vmatprep.mubr.f32.mxu0 %v145_v62  ;;  %433 = vmatprep.mubr.f32.mxu1 %v153_v61 }
  0x9f   :  { %v129_v1 = vpop.permute.xlu1 %128  ;;  %v89_v2 = vpop.permute.xlu0 %88 }
  0xa0   :  { %v154_v3 = vmul.f32 %v129_v1, %v42_v63  ;;  %v146_v4 = vmul.f32 %v89_v2, %v34_v0 }
  0xa2   :  { %422 = vmatmul.mubr.f32.gmra.mxu0 %v146_v4  ;;  %434 = vmatmul.mubr.f32.gmra.mxu1 %v154_v3 }
  0xa3   :  { %v134_v7 = vpop.permute.xlu1 %133  ;;  %v94_v8 = vpop.permute.xlu0 %93 }
  0xa4   :  { %v155_v9 = vmul.f32 %v134_v7, %v43_v5  ;;  %v147_v10 = vmul.f32 %v94_v8, %v35_v6 }
  0xa6   :  { %424 = vmatprep.mubr.f32.mxu0 %v147_v10  ;;  %436 = vmatprep.mubr.f32.mxu1 %v155_v9 }
  0xa7   :  { %v139_v13 = vpop.permute.xlu1 %138  ;;  %v99_v14 = vpop.permute.xlu0 %98 }
  0xa8   :  { %v156_v15 = vmul.f32 %v139_v13, %v44_v11  ;;  %v148_v16 = vmul.f32 %v99_v14, %v36_v12 }
  0xaa   :  { %425 = vmatmul.mubr.f32.gmra.mxu0 %v148_v16  ;;  %437 = vmatmul.mubr.f32.gmra.mxu1 %v156_v15 }
 0x14f   :  { %v417_v17 = vpop.f32.mrf.mxu0 }
 0x150   :  { %319 = vst [vmem:[#allocation5 + $0x8] sm:$0xff] %v417_v17 }
 0x151   :  { %v239_v18 = vpop.f32.mrf.mxu0 }
 0x152   :  { %318 = vst [vmem:[#allocation5] sm:$0xff] %v239_v18 }
 0x153   :  { %v429_v19 = vpop.f32.mrf.mxu1 }
 0x154   :  { %327 = vst [vmem:[#allocation5 + $0x48] sm:$0xff] %v429_v19 }
 0x155   :  { %v279_v20 = vpop.f32.mrf.mxu1 }
 0x156   :  { %326 = vst [vmem:[#allocation5 + $0x40] sm:$0xff] %v279_v20 }
 0x15a   :  { %v420_v21 = vpop.f32.mrf.mxu0  ;;  %v432_v22 = vpop.f32.mrf.mxu1 }
 0x15b   :  { %321 = vst [vmem:[#allocation5 + $0x18] sm:$0xff] %v420_v21  ;;  %329 = vst [vmem:[#allocation5 + $0x58] sm:$0xff] %v432_v22 }
 0x15c   :  { %v249_v23 = vpop.f32.mrf.mxu0  ;;  %v289_v24 = vpop.f32.mrf.mxu1 }
 0x15d   :  { %320 = vst [vmem:[#allocation5 + $0x10] sm:$0xff] %v249_v23  ;;  %328 = vst [vmem:[#allocation5 + $0x50] sm:$0xff] %v289_v24 }
 0x162   :  { %v423_v25 = vpop.f32.mrf.mxu0  ;;  %v435_v26 = vpop.f32.mrf.mxu1 }
 0x163   :  { %323 = vst [vmem:[#allocation5 + $0x28] sm:$0xff] %v423_v25  ;;  %331 = vst [vmem:[#allocation5 + $0x68] sm:$0xff] %v435_v26 }
 0x164   :  { %v259_v27 = vpop.f32.mrf.mxu0  ;;  %v299_v28 = vpop.f32.mrf.mxu1 }
 0x165   :  { %322 = vst [vmem:[#allocation5 + $0x20] sm:$0xff] %v259_v27  ;;  %330 = vst [vmem:[#allocation5 + $0x60] sm:$0xff] %v299_v28 }
 0x16a   :  { %v426_v29 = vpop.f32.mrf.mxu0  ;;  %v438_v30 = vpop.f32.mrf.mxu1 }
 0x16b   :  { %325 = vst [vmem:[#allocation5 + $0x38] sm:$0xff] %v426_v29  ;;  %333 = vst [vmem:[#allocation5 + $0x78] sm:$0xff] %v438_v30 }
 0x16c   :  { %v269_v31 = vpop.f32.mrf.mxu0  ;;  %v309_v32 = vpop.f32.mrf.mxu1 }
 0x16d   :  { %324 = vst [vmem:[#allocation5 + $0x30] sm:$0xff] %v269_v31  ;;  %332 = vst [vmem:[#allocation5 + $0x70] sm:$0xff] %v309_v32 }
 0x16e   :  { %509 = shalt.err (!%p506_p9)
}
 0x16f   :  { %345 = dma.vmem_to_hbm [thread:$0]  %s340_s28, 2048, %s658_s3, [#allocation4], %s523_s15, %s523_s15, %s524_s16  }
 0x170   :  { %520 = dma.done.wait [#allocation4], 2048  }
 0x171   :  { %521 = vsyncadd [#allocation4], 4294965248 }
 0x172   :  { %349 = vsyncpa [#allocation3], 1 }
 0x173   :  { %350 = vsyncpa [#allocation4], 1 }

</bundles_post_ra>
